<compile_context>
chip_gen: v7x
topology: tpu7x:2x2x1
jax: 0.10.0
libtpu: 0.0.40
codegen_flags: <defaults>
</compile_context>

<pallas_src>
from functools import partial

import jax
import jax.numpy as jnp
from jax.experimental import pallas as pl
from jax.experimental.pallas import tpu as pltpu


def _lstm_fused_kernel(x_ref, wihT_ref, whhT_ref, b_ref, woutT_ref, bout_ref,
                       h0_ref, c0_ref,
                       y_ref, hn_ref, cn_ref,
                       gx_sc, hall_sc, h_sc, c_sc):
    """One grid step = one chunk of Tc timesteps.

    (1) batched bf16 input projection for the whole chunk,
    (2) unrolled f32 recurrence (bf16 MXU operands for h @ W_hh^T),
    (3) lane-dense bf16 output-head matmul over the chunk's hidden slab.
    (h, c) are carried across chunks in VMEM scratch.
    """
    Bp, H = h0_ref.shape
    Tc = hall_sc.shape[0] // Bp

    # First chunk: seed the carried state from the provided initial state.
    @pl.when(pl.program_id(0) == 0)
    def _():
        h_sc[...] = h0_ref[...]
        c_sc[...] = c0_ref[...]

    # (1) Input projection for all timesteps of this chunk in one MXU matmul,
    #     bias folded in.  Materialized in VMEM scratch to bound vreg pressure.
    gx_sc[...] = (jnp.dot(x_ref[...], wihT_ref[...],
                          preferred_element_type=jnp.float32)
                  + b_ref[...])                                 # (Tc*Bp, 4H) f32

    whhT = whhT_ref[...]                                        # (H, 4H) bf16
    h = h_sc[...]                                               # (Bp, H) f32
    c = c_sc[...]                                               # (Bp, H) f32

    # (2) Sequential recurrence, fully unrolled within the chunk (Tc static).
    for t in range(Tc):
        gates = gx_sc[t * Bp:(t + 1) * Bp, :] + jnp.dot(
            h.astype(jnp.bfloat16), whhT,
            preferred_element_type=jnp.float32)                 # (Bp, 4H) f32

        # Dense activations over the full gates vreg, then lane slices.
        sig = jax.nn.sigmoid(gates)
        th = jnp.tanh(gates)
        # PyTorch gate order: [i, f, g, o]
        i_g = sig[:, 0 * H:1 * H]
        f_g = sig[:, 1 * H:2 * H]
        g_g = th[:, 2 * H:3 * H]
        o_g = sig[:, 3 * H:4 * H]

        c = f_g * c + i_g * g_g
        h = o_g * jnp.tanh(c)

        hall_sc[t * Bp:(t + 1) * Bp, :] = h                     # sublane-aligned

    # Carry state to the next chunk / expose final state.
    h_sc[...] = h
    c_sc[...] = c
    hn_ref[...] = h
    cn_ref[...] = c

    # (3) Lane-dense output head applied once over the chunk's hidden slab.
    y_ref[...] = (jnp.dot(hall_sc[...].astype(jnp.bfloat16), woutT_ref[...],
                          preferred_element_type=jnp.float32)
                  + bout_ref[...])                              # (Tc*Bp, OP)


@partial(jax.jit, static_argnames=("t_chunk",))
def rnn_model_forward(X, state, params, t_chunk=None):
    """Mirrors RnnModel.forward: returns (output, (h_n, c_n))."""
    emb = params["embedding"]      # (V, E)
    w_ih = params["w_ih"]          # (4H, E)
    w_hh = params["w_hh"]          # (4H, H)
    b_ih = params["b_ih"]          # (4H,)
    b_hh = params["b_hh"]          # (4H,)
    w_out = params["w_out"]        # (O, H)
    b_out = params["b_out"]        # (O,)

    T, B = X.shape
    E = emb.shape[1]
    H = w_hh.shape[1]
    O = w_out.shape[0]

    Bp = max(8, -(-B // 8) * 8)          # pad batch to a multiple of 8 sublanes
    OP = -(-O // 128) * 128              # pad output head to lane-dense 128

    if t_chunk is None:
        t_chunk = T
    assert T % t_chunk == 0, "T must be divisible by t_chunk"
    n_chunks = T // t_chunk

    # --- glue: embedding lookup (gather) in plain JAX ---
    x = jnp.take(emb, X.astype(jnp.int32), axis=0).astype(jnp.float32)  # (T, B, E)

    h0, c0 = state                                                      # (1, B, H)
    h0 = h0.reshape(B, H).astype(jnp.float32)
    c0 = c0.reshape(B, H).astype(jnp.float32)

    if Bp != B:
        x = jnp.pad(x, ((0, 0), (0, Bp - B), (0, 0)))
        h0 = jnp.pad(h0, ((0, Bp - B), (0, 0)))
        c0 = jnp.pad(c0, ((0, Bp - B), (0, 0)))

    # bf16 MXU operands (f32 accumulation happens in-kernel).
    x2d = x.reshape(T * Bp, E).astype(jnp.bfloat16)                     # (T*Bp, E)
    wihT = jnp.asarray(w_ih, jnp.float32).T.astype(jnp.bfloat16)        # (E, 4H)
    whhT = jnp.asarray(w_hh, jnp.float32).T.astype(jnp.bfloat16)        # (H, 4H)
    b = (jnp.asarray(b_ih, jnp.float32)
         + jnp.asarray(b_hh, jnp.float32)).reshape(1, 4 * H)            # (1, 4H)
    woutT_pad = jnp.pad(jnp.asarray(w_out, jnp.float32).T,
                        ((0, 0), (0, OP - O))).astype(jnp.bfloat16)     # (H, OP)
    bout_pad = jnp.pad(jnp.asarray(b_out, jnp.float32),
                       ((0, OP - O),)).reshape(1, OP)                   # (1, OP)

    const2 = lambda shape: pl.BlockSpec(shape, lambda i: (0, 0))

    y2d, h_n, c_n = pl.pallas_call(
        _lstm_fused_kernel,
        out_shape=(
            jax.ShapeDtypeStruct((T * Bp, OP), jnp.float32),
            jax.ShapeDtypeStruct((Bp, H), jnp.float32),
            jax.ShapeDtypeStruct((Bp, H), jnp.float32),
        ),
        grid_spec=pltpu.PrefetchScalarGridSpec(
            num_scalar_prefetch=0,
            grid=(n_chunks,),
            in_specs=[
                pl.BlockSpec((t_chunk * Bp, E), lambda i: (i, 0)),   # x chunk
                const2((E, 4 * H)),          # W_ih^T
                const2((H, 4 * H)),          # W_hh^T
                const2((1, 4 * H)),          # b_ih + b_hh
                const2((H, OP)),             # W_out^T (lane-padded)
                const2((1, OP)),             # b_out   (lane-padded)
                const2((Bp, H)),             # h0
                const2((Bp, H)),             # c0
            ],
            out_specs=[
                pl.BlockSpec((t_chunk * Bp, OP), lambda i: (i, 0)),  # y chunk
                const2((Bp, H)),             # h_n
                const2((Bp, H)),             # c_n
            ],
            scratch_shapes=[
                pltpu.VMEM((t_chunk * Bp, 4 * H), jnp.float32),      # gx chunk
                pltpu.VMEM((t_chunk * Bp, H), jnp.float32),          # hidden slab
                pltpu.VMEM((Bp, H), jnp.float32),                    # h carry
                pltpu.VMEM((Bp, H), jnp.float32),                    # c carry
            ],
        ),
        compiler_params=pltpu.CompilerParams(
            dimension_semantics=("arbitrary",),      # serial recurrence over chunks
            vmem_limit_bytes=32 * 1024 * 1024,       # fits v5e/v6e/v7x scoped VMEM
        ),
    )(x2d, wihT, whhT, b, woutT_pad, bout_pad, h0, c0)

    y = y2d.reshape(T, Bp, OP)[:, :B, :O]
    h_n = h_n[:B].reshape(1, B, H)
    c_n = c_n[:B].reshape(1, B, H)
    return y, (h_n, c_n)


def _init_params(key, vocab_size, num_hiddens, embedding_size, output_size):
    """Deterministic parameter init (PyTorch-style uniform ranges)."""
    ks = jax.random.split(key, 8)
    H, E, O, V = num_hiddens, embedding_size, output_size, vocab_size
    k_lstm = 1.0 / jnp.sqrt(H)
    k_lin = 1.0 / jnp.sqrt(H)
    u = lambda k, shape, bnd: jax.random.uniform(k, shape, jnp.float32, -bnd, bnd)
    return {
        "embedding": jax.random.normal(ks[0], (V, E), jnp.float32),
        "w_ih": u(ks[1], (4 * H, E), k_lstm),
        "w_hh": u(ks[2], (4 * H, H), k_lstm),
        "b_ih": u(ks[3], (4 * H,), k_lstm),
        "b_hh": u(ks[4], (4 * H,), k_lstm),
        "w_out": u(ks[5], (O, H), k_lin),
        "b_out": u(ks[6], (O,), k_lin),
    }


def _reference_forward(X, state, params):
    """Pure-JAX f32 reference (lax.scan LSTM) for a correctness check."""
    emb = params["embedding"]
    x = jnp.take(emb, X.astype(jnp.int32), axis=0)            # (T, B, E)
    H = params["w_hh"].shape[1]
    h0, c0 = state
    h0 = h0.reshape(-1, H)
    c0 = c0.reshape(-1, H)
    wihT = params["w_ih"].T
    whhT = params["w_hh"].T
    b = params["b_ih"] + params["b_hh"]

    def step(carry, x_t):
        h, c = carry
        gates = x_t @ wihT + h @ whhT + b
        i = jax.nn.sigmoid(gates[:, 0 * H:1 * H])
        f = jax.nn.sigmoid(gates[:, 1 * H:2 * H])
        g = jnp.tanh(gates[:, 2 * H:3 * H])
        o = jax.nn.sigmoid(gates[:, 3 * H:4 * H])
        c_new = f * c + i * g
        h_new = o * jnp.tanh(c_new)
        return (h_new, c_new), h_new

    (h_n, c_n), hs = jax.lax.scan(step, (h0, c0), x)
    y = hs @ params["w_out"].T + params["b_out"]
    return y, (h_n[None], c_n[None])


if __name__ == "__main__":
    VOCAB, HIDDEN, EMBED, OUT = 32, 32, 16, 8
    T, B = 8, 4

    key = jax.random.PRNGKey(0)
    k_param, k_x = jax.random.split(key)
    params = _init_params(k_param, VOCAB, HIDDEN, EMBED, OUT)

    X = jax.random.randint(k_x, (T, B), 0, VOCAB, dtype=jnp.int32)
    state = (jnp.zeros((1, B, HIDDEN), jnp.float32),
             jnp.zeros((1, B, HIDDEN), jnp.float32))

    # t_chunk=4 -> grid=(2,), exercising the cross-chunk (h, c) carry.
    out, (h_n, c_n) = rnn_model_forward(X, state, params, t_chunk=4)
    jax.block_until_ready((out, h_n, c_n))

    # Correctness check vs. f32 reference.  Tolerance is relaxed relative to
    # bit-exact f32 because MXU operands are bf16 (f32 accumulation).
    ref_out, (ref_h, ref_c) = _reference_forward(X, state, params)
    assert out.shape == (T, B, OUT)
    assert h_n.shape == (1, B, HIDDEN) and c_n.shape == (1, B, HIDDEN)
    assert jnp.allclose(out, ref_out, atol=2e-2, rtol=2e-2)
    assert jnp.allclose(h_n, ref_h, atol=2e-2, rtol=2e-2)
    assert jnp.allclose(c_n, ref_c, atol=2e-2, rtol=2e-2)

    print("KERNEL_OK")
</pallas_src>

<mosaic_0001>
module attributes {stable_mosaic.version = 11 : i64} {
  func.func @_lstm_fused_kernel(%arg0: i32, %arg1: memref<32x16xbf16, #tpu.memory_space<vmem>>, %arg2: memref<16x128xbf16, #tpu.memory_space<vmem>>, %arg3: memref<32x128xbf16, #tpu.memory_space<vmem>>, %arg4: memref<1x128xf32, #tpu.memory_space<vmem>>, %arg5: memref<32x128xbf16, #tpu.memory_space<vmem>>, %arg6: memref<1x128xf32, #tpu.memory_space<vmem>>, %arg7: memref<8x32xf32, #tpu.memory_space<vmem>>, %arg8: memref<8x32xf32, #tpu.memory_space<vmem>>, %arg9: memref<32x128xf32, #tpu.memory_space<vmem>>, %arg10: memref<8x32xf32, #tpu.memory_space<vmem>>, %arg11: memref<8x32xf32, #tpu.memory_space<vmem>>, %arg12: memref<32x128xf32, #tpu.memory_space<vmem>>, %arg13: memref<32x32xf32, #tpu.memory_space<vmem>>, %arg14: memref<8x32xf32, #tpu.memory_space<vmem>>, %arg15: memref<8x32xf32, #tpu.memory_space<vmem>>) attributes {dimension_semantics = [#tpu.dimension_semantics<arbitrary>], iteration_bounds = array<i64: 2>, scalar_prefetch = 0 : i64, scratch_operands = 4 : i64, tpu.core_type = #tpu.core_type<tc>, window_params = [{transform_indices = @transform_0, window_bounds = array<i64: 32, 16>}, {pipeline_mode = #tpu.pipeline_mode<synchronous>, transform_indices = @transform_1, window_bounds = array<i64: 16, 128>}, {pipeline_mode = #tpu.pipeline_mode<synchronous>, transform_indices = @transform_2, window_bounds = array<i64: 32, 128>}, {pipeline_mode = #tpu.pipeline_mode<synchronous>, transform_indices = @transform_3, window_bounds = array<i64: 1, 128>}, {pipeline_mode = #tpu.pipeline_mode<synchronous>, transform_indices = @transform_4, window_bounds = array<i64: 32, 128>}, {pipeline_mode = #tpu.pipeline_mode<synchronous>, transform_indices = @transform_5, window_bounds = array<i64: 1, 128>}, {pipeline_mode = #tpu.pipeline_mode<synchronous>, transform_indices = @transform_6, window_bounds = array<i64: 8, 32>}, {pipeline_mode = #tpu.pipeline_mode<synchronous>, transform_indices = @transform_7, window_bounds = array<i64: 8, 32>}, {transform_indices = @transform_8, window_bounds = array<i64: 32, 128>}, {pipeline_mode = #tpu.pipeline_mode<synchronous>, transform_indices = @transform_9, window_bounds = array<i64: 8, 32>}, {pipeline_mode = #tpu.pipeline_mode<synchronous>, transform_indices = @transform_10, window_bounds = array<i64: 8, 32>}]} {
    %c0_i32 = arith.constant 0 : i32
    %0 = arith.cmpi eq, %arg0, %c0_i32 : i32
    %1 = arith.extui %0 : i1 to i32
    %c0_i32_0 = arith.constant 0 : i32
    %2 = arith.cmpi ne, %1, %c0_i32_0 : i32
    scf.if %2 {
      %c0_52 = arith.constant 0 : index
      %c0_53 = arith.constant 0 : index
      %105 = vector.load %arg7[%c0_52, %c0_53] : memref<8x32xf32, #tpu.memory_space<vmem>>, vector<8x32xf32>
      %c0_54 = arith.constant 0 : index
      %c0_55 = arith.constant 0 : index
      %106 = vector.load %arg14[%c0_54, %c0_55] : memref<8x32xf32, #tpu.memory_space<vmem>>, vector<8x32xf32>
      tpu.vector_store %arg14[%c0_54, %c0_55], %105 {strides = array<i32>} : memref<8x32xf32, #tpu.memory_space<vmem>>, vector<8x32xf32>,
      %c0_56 = arith.constant 0 : index
      %c0_57 = arith.constant 0 : index
      %107 = vector.load %arg8[%c0_56, %c0_57] : memref<8x32xf32, #tpu.memory_space<vmem>>, vector<8x32xf32>
      %c0_58 = arith.constant 0 : index
      %c0_59 = arith.constant 0 : index
      %108 = vector.load %arg15[%c0_58, %c0_59] : memref<8x32xf32, #tpu.memory_space<vmem>>, vector<8x32xf32>
      tpu.vector_store %arg15[%c0_58, %c0_59], %107 {strides = array<i32>} : memref<8x32xf32, #tpu.memory_space<vmem>>, vector<8x32xf32>,
    } else {
    }
    %c0 = arith.constant 0 : index
    %c0_1 = arith.constant 0 : index
    %3 = vector.load %arg1[%c0, %c0_1] : memref<32x16xbf16, #tpu.memory_space<vmem>>, vector<32x16xbf16>
    %c0_2 = arith.constant 0 : index
    %c0_3 = arith.constant 0 : index
    %4 = vector.load %arg2[%c0_2, %c0_3] : memref<16x128xbf16, #tpu.memory_space<vmem>>, vector<16x128xbf16>
    %cst = arith.constant dense<0.000000e+00> : vector<32x128xf32>
    %5 = tpu.matmul %3, %4, %cst {dimension_numbers = #tpu.dot_dimension_numbers<[1], [0], [0], [1], [0, 0, 1, 1], [], []>} : vector<32x16xbf16>, vector<16x128xbf16>, vector<32x128xf32> -> vector<32x128xf32>
    %c0_4 = arith.constant 0 : index
    %c0_5 = arith.constant 0 : index
    %6 = vector.load %arg4[%c0_4, %c0_5] : memref<1x128xf32, #tpu.memory_space<vmem>>, vector<1x128xf32>
    %7 = vector.broadcast %6 : vector<1x128xf32> to vector<32x128xf32>
    %8 = arith.addf %5, %7 : vector<32x128xf32>
    %c0_6 = arith.constant 0 : index
    %c0_7 = arith.constant 0 : index
    %9 = vector.load %arg12[%c0_6, %c0_7] : memref<32x128xf32, #tpu.memory_space<vmem>>, vector<32x128xf32>
    tpu.vector_store %arg12[%c0_6, %c0_7], %8 {strides = array<i32>} : memref<32x128xf32, #tpu.memory_space<vmem>>, vector<32x128xf32>,
    %c0_8 = arith.constant 0 : index
    %c0_9 = arith.constant 0 : index
    %10 = vector.load %arg3[%c0_8, %c0_9] : memref<32x128xbf16, #tpu.memory_space<vmem>>, vector<32x128xbf16>
    %c0_10 = arith.constant 0 : index
    %c0_11 = arith.constant 0 : index
    %11 = vector.load %arg14[%c0_10, %c0_11] : memref<8x32xf32, #tpu.memory_space<vmem>>, vector<8x32xf32>
    %c0_12 = arith.constant 0 : index
    %c0_13 = arith.constant 0 : index
    %12 = vector.load %arg15[%c0_12, %c0_13] : memref<8x32xf32, #tpu.memory_space<vmem>>, vector<8x32xf32>
    %c0_14 = arith.constant 0 : index
    %c0_15 = arith.constant 0 : index
    %13 = vector.load %arg12[%c0_14, %c0_15] : memref<32x128xf32, #tpu.memory_space<vmem>>, vector<8x128xf32>
    %14 = arith.truncf %11 : vector<8x32xf32> to vector<8x32xbf16>
    %cst_16 = arith.constant dense<0.000000e+00> : vector<8x128xf32>
    %15 = tpu.matmul %14, %10, %cst_16 {dimension_numbers = #tpu.dot_dimension_numbers<[1], [0], [0], [1], [0, 0, 1, 1], [], []>} : vector<8x32xbf16>, vector<32x128xbf16>, vector<8x128xf32> -> vector<8x128xf32>
    %16 = arith.addf %13, %15 : vector<8x128xf32>
    %17 = arith.negf %16 : vector<8x128xf32>
    %18 = math.exp %17 : vector<8x128xf32>
    %cst_17 = arith.constant 1.000000e+00 : f32
    %19 = vector.broadcast %cst_17 : f32 to vector<8x128xf32>
    %20 = arith.addf %19, %18 : vector<8x128xf32>
    %21 = arith.divf %19, %20 : vector<8x128xf32>
    %22 = math.tanh %16 : vector<8x128xf32>
    %23 = vector.extract_strided_slice %21 {offsets = [0, 0], sizes = [8, 32], strides = [1, 1]} : vector<8x128xf32> to vector<8x32xf32>
    %24 = vector.extract_strided_slice %21 {offsets = [0, 32], sizes = [8, 32], strides = [1, 1]} : vector<8x128xf32> to vector<8x32xf32>
    %25 = vector.extract_strided_slice %22 {offsets = [0, 64], sizes = [8, 32], strides = [1, 1]} : vector<8x128xf32> to vector<8x32xf32>
    %26 = vector.extract_strided_slice %21 {offsets = [0, 96], sizes = [8, 32], strides = [1, 1]} : vector<8x128xf32> to vector<8x32xf32>
    %27 = arith.mulf %24, %12 : vector<8x32xf32>
    %28 = arith.mulf %23, %25 : vector<8x32xf32>
    %29 = arith.addf %27, %28 : vector<8x32xf32>
    %30 = math.tanh %29 : vector<8x32xf32>
    %31 = arith.mulf %26, %30 : vector<8x32xf32>
    %c0_18 = arith.constant 0 : index
    %c0_19 = arith.constant 0 : index
    %32 = vector.load %arg13[%c0_18, %c0_19] : memref<32x32xf32, #tpu.memory_space<vmem>>, vector<8x32xf32>
    tpu.vector_store %arg13[%c0_18, %c0_19], %31 {strides = array<i32>} : memref<32x32xf32, #tpu.memory_space<vmem>>, vector<8x32xf32>,
    %c8 = arith.constant 8 : index
    %c0_20 = arith.constant 0 : index
    %33 = vector.load %arg12[%c8, %c0_20] : memref<32x128xf32, #tpu.memory_space<vmem>>, vector<8x128xf32>
    %34 = arith.truncf %31 : vector<8x32xf32> to vector<8x32xbf16>
    %cst_21 = arith.constant dense<0.000000e+00> : vector<8x128xf32>
    %35 = tpu.matmul %34, %10, %cst_21 {dimension_numbers = #tpu.dot_dimension_numbers<[1], [0], [0], [1], [0, 0, 1, 1], [], []>} : vector<8x32xbf16>, vector<32x128xbf16>, vector<8x128xf32> -> vector<8x128xf32>
    %36 = arith.addf %33, %35 : vector<8x128xf32>
    %37 = arith.negf %36 : vector<8x128xf32>
    %38 = math.exp %37 : vector<8x128xf32>
    %cst_22 = arith.constant 1.000000e+00 : f32
    %39 = vector.broadcast %cst_22 : f32 to vector<8x128xf32>
    %40 = arith.addf %39, %38 : vector<8x128xf32>
    %41 = arith.divf %39, %40 : vector<8x128xf32>
    %42 = math.tanh %36 : vector<8x128xf32>
    %43 = vector.extract_strided_slice %41 {offsets = [0, 0], sizes = [8, 32], strides = [1, 1]} : vector<8x128xf32> to vector<8x32xf32>
    %44 = vector.extract_strided_slice %41 {offsets = [0, 32], sizes = [8, 32], strides = [1, 1]} : vector<8x128xf32> to vector<8x32xf32>
    %45 = vector.extract_strided_slice %42 {offsets = [0, 64], sizes = [8, 32], strides = [1, 1]} : vector<8x128xf32> to vector<8x32xf32>
    %46 = vector.extract_strided_slice %41 {offsets = [0, 96], sizes = [8, 32], strides = [1, 1]} : vector<8x128xf32> to vector<8x32xf32>
    %47 = arith.mulf %44, %29 : vector<8x32xf32>
    %48 = arith.mulf %43, %45 : vector<8x32xf32>
    %49 = arith.addf %47, %48 : vector<8x32xf32>
    %50 = math.tanh %49 : vector<8x32xf32>
    %51 = arith.mulf %46, %50 : vector<8x32xf32>
    %c8_23 = arith.constant 8 : index
    %c0_24 = arith.constant 0 : index
    %52 = vector.load %arg13[%c8_23, %c0_24] : memref<32x32xf32, #tpu.memory_space<vmem>>, vector<8x32xf32>
    tpu.vector_store %arg13[%c8_23, %c0_24], %51 {strides = array<i32>} : memref<32x32xf32, #tpu.memory_space<vmem>>, vector<8x32xf32>,
    %c16 = arith.constant 16 : index
    %c0_25 = arith.constant 0 : index
    %53 = vector.load %arg12[%c16, %c0_25] : memref<32x128xf32, #tpu.memory_space<vmem>>, vector<8x128xf32>
    %54 = arith.truncf %51 : vector<8x32xf32> to vector<8x32xbf16>
    %cst_26 = arith.constant dense<0.000000e+00> : vector<8x128xf32>
    %55 = tpu.matmul %54, %10, %cst_26 {dimension_numbers = #tpu.dot_dimension_numbers<[1], [0], [0], [1], [0, 0, 1, 1], [], []>} : vector<8x32xbf16>, vector<32x128xbf16>, vector<8x128xf32> -> vector<8x128xf32>
    %56 = arith.addf %53, %55 : vector<8x128xf32>
    %57 = arith.negf %56 : vector<8x128xf32>
    %58 = math.exp %57 : vector<8x128xf32>
    %cst_27 = arith.constant 1.000000e+00 : f32
    %59 = vector.broadcast %cst_27 : f32 to vector<8x128xf32>
    %60 = arith.addf %59, %58 : vector<8x128xf32>
    %61 = arith.divf %59, %60 : vector<8x128xf32>
    %62 = math.tanh %56 : vector<8x128xf32>
    %63 = vector.extract_strided_slice %61 {offsets = [0, 0], sizes = [8, 32], strides = [1, 1]} : vector<8x128xf32> to vector<8x32xf32>
    %64 = vector.extract_strided_slice %61 {offsets = [0, 32], sizes = [8, 32], strides = [1, 1]} : vector<8x128xf32> to vector<8x32xf32>
    %65 = vector.extract_strided_slice %62 {offsets = [0, 64], sizes = [8, 32], strides = [1, 1]} : vector<8x128xf32> to vector<8x32xf32>
    %66 = vector.extract_strided_slice %61 {offsets = [0, 96], sizes = [8, 32], strides = [1, 1]} : vector<8x128xf32> to vector<8x32xf32>
    %67 = arith.mulf %64, %49 : vector<8x32xf32>
    %68 = arith.mulf %63, %65 : vector<8x32xf32>
    %69 = arith.addf %67, %68 : vector<8x32xf32>
    %70 = math.tanh %69 : vector<8x32xf32>
    %71 = arith.mulf %66, %70 : vector<8x32xf32>
    %c16_28 = arith.constant 16 : index
    %c0_29 = arith.constant 0 : index
    %72 = vector.load %arg13[%c16_28, %c0_29] : memref<32x32xf32, #tpu.memory_space<vmem>>, vector<8x32xf32>
    tpu.vector_store %arg13[%c16_28, %c0_29], %71 {strides = array<i32>} : memref<32x32xf32, #tpu.memory_space<vmem>>, vector<8x32xf32>,
    %c24 = arith.constant 24 : index
    %c0_30 = arith.constant 0 : index
    %73 = vector.load %arg12[%c24, %c0_30] : memref<32x128xf32, #tpu.memory_space<vmem>>, vector<8x128xf32>
    %74 = arith.truncf %71 : vector<8x32xf32> to vector<8x32xbf16>
    %cst_31 = arith.constant dense<0.000000e+00> : vector<8x128xf32>
    %75 = tpu.matmul %74, %10, %cst_31 {dimension_numbers = #tpu.dot_dimension_numbers<[1], [0], [0], [1], [0, 0, 1, 1], [], []>} : vector<8x32xbf16>, vector<32x128xbf16>, vector<8x128xf32> -> vector<8x128xf32>
    %76 = arith.addf %73, %75 : vector<8x128xf32>
    %77 = arith.negf %76 : vector<8x128xf32>
    %78 = math.exp %77 : vector<8x128xf32>
    %cst_32 = arith.constant 1.000000e+00 : f32
    %79 = vector.broadcast %cst_32 : f32 to vector<8x128xf32>
    %80 = arith.addf %79, %78 : vector<8x128xf32>
    %81 = arith.divf %79, %80 : vector<8x128xf32>
    %82 = math.tanh %76 : vector<8x128xf32>
    %83 = vector.extract_strided_slice %81 {offsets = [0, 0], sizes = [8, 32], strides = [1, 1]} : vector<8x128xf32> to vector<8x32xf32>
    %84 = vector.extract_strided_slice %81 {offsets = [0, 32], sizes = [8, 32], strides = [1, 1]} : vector<8x128xf32> to vector<8x32xf32>
    %85 = vector.extract_strided_slice %82 {offsets = [0, 64], sizes = [8, 32], strides = [1, 1]} : vector<8x128xf32> to vector<8x32xf32>
    %86 = vector.extract_strided_slice %81 {offsets = [0, 96], sizes = [8, 32], strides = [1, 1]} : vector<8x128xf32> to vector<8x32xf32>
    %87 = arith.mulf %84, %69 : vector<8x32xf32>
    %88 = arith.mulf %83, %85 : vector<8x32xf32>
    %89 = arith.addf %87, %88 : vector<8x32xf32>
    %90 = math.tanh %89 : vector<8x32xf32>
    %91 = arith.mulf %86, %90 : vector<8x32xf32>
    %c24_33 = arith.constant 24 : index
    %c0_34 = arith.constant 0 : index
    %92 = vector.load %arg13[%c24_33, %c0_34] : memref<32x32xf32, #tpu.memory_space<vmem>>, vector<8x32xf32>
    tpu.vector_store %arg13[%c24_33, %c0_34], %91 {strides = array<i32>} : memref<32x32xf32, #tpu.memory_space<vmem>>, vector<8x32xf32>,
    %c0_35 = arith.constant 0 : index
    %c0_36 = arith.constant 0 : index
    %93 = vector.load %arg14[%c0_35, %c0_36] : memref<8x32xf32, #tpu.memory_space<vmem>>, vector<8x32xf32>
    tpu.vector_store %arg14[%c0_35, %c0_36], %91 {strides = array<i32>} : memref<8x32xf32, #tpu.memory_space<vmem>>, vector<8x32xf32>,
    %c0_37 = arith.constant 0 : index
    %c0_38 = arith.constant 0 : index
    %94 = vector.load %arg15[%c0_37, %c0_38] : memref<8x32xf32, #tpu.memory_space<vmem>>, vector<8x32xf32>
    tpu.vector_store %arg15[%c0_37, %c0_38], %89 {strides = array<i32>} : memref<8x32xf32, #tpu.memory_space<vmem>>, vector<8x32xf32>,
    %c0_39 = arith.constant 0 : index
    %c0_40 = arith.constant 0 : index
    %95 = vector.load %arg10[%c0_39, %c0_40] : memref<8x32xf32, #tpu.memory_space<vmem>>, vector<8x32xf32>
    tpu.vector_store %arg10[%c0_39, %c0_40], %91 {strides = array<i32>} : memref<8x32xf32, #tpu.memory_space<vmem>>, vector<8x32xf32>,
    %c0_41 = arith.constant 0 : index
    %c0_42 = arith.constant 0 : index
    %96 = vector.load %arg11[%c0_41, %c0_42] : memref<8x32xf32, #tpu.memory_space<vmem>>, vector<8x32xf32>
    tpu.vector_store %arg11[%c0_41, %c0_42], %89 {strides = array<i32>} : memref<8x32xf32, #tpu.memory_space<vmem>>, vector<8x32xf32>,
    %c0_43 = arith.constant 0 : index
    %c0_44 = arith.constant 0 : index
    %97 = vector.load %arg13[%c0_43, %c0_44] : memref<32x32xf32, #tpu.memory_space<vmem>>, vector<32x32xf32>
    %98 = arith.truncf %97 : vector<32x32xf32> to vector<32x32xbf16>
    %c0_45 = arith.constant 0 : index
    %c0_46 = arith.constant 0 : index
    %99 = vector.load %arg5[%c0_45, %c0_46] : memref<32x128xbf16, #tpu.memory_space<vmem>>, vector<32x128xbf16>
    %cst_47 = arith.constant dense<0.000000e+00> : vector<32x128xf32>
    %100 = tpu.matmul %98, %99, %cst_47 {dimension_numbers = #tpu.dot_dimension_numbers<[1], [0], [0], [1], [0, 0, 1, 1], [], []>} : vector<32x32xbf16>, vector<32x128xbf16>, vector<32x128xf32> -> vector<32x128xf32>
    %c0_48 = arith.constant 0 : index
    %c0_49 = arith.constant 0 : index
    %101 = vector.load %arg6[%c0_48, %c0_49] : memref<1x128xf32, #tpu.memory_space<vmem>>, vector<1x128xf32>
    %102 = vector.broadcast %101 : vector<1x128xf32> to vector<32x128xf32>
    %103 = arith.addf %100, %102 : vector<32x128xf32>
    %c0_50 = arith.constant 0 : index
    %c0_51 = arith.constant 0 : index
    %104 = vector.load %arg9[%c0_50, %c0_51] : memref<32x128xf32, #tpu.memory_space<vmem>>, vector<32x128xf32>
    tpu.vector_store %arg9[%c0_50, %c0_51], %103 {strides = array<i32>} : memref<32x128xf32, #tpu.memory_space<vmem>>, vector<32x128xf32>,
    return
  }
  func.func @transform_0(%arg0: i32) -> (i32, i32) {
    %c0_i32 = arith.constant 0 : i32
    %c0_i32_0 = arith.constant 0 : i32
    return %arg0, %c0_i32 : i32, i32
  }
  func.func @transform_1(%arg0: i32) -> (i32, i32) {
    %c0_i32 = arith.constant 0 : i32
    %c0_i32_0 = arith.constant 0 : i32
    %c0_i32_1 = arith.constant 0 : i32
    return %c0_i32, %c0_i32_0 : i32, i32
  }
  func.func @transform_2(%arg0: i32) -> (i32, i32) {
    %c0_i32 = arith.constant 0 : i32
    %c0_i32_0 = arith.constant 0 : i32
    %c0_i32_1 = arith.constant 0 : i32
    return %c0_i32, %c0_i32_0 : i32, i32
  }
  func.func @transform_3(%arg0: i32) -> (i32, i32) {
    %c0_i32 = arith.constant 0 : i32
    %c0_i32_0 = arith.constant 0 : i32
    %c0_i32_1 = arith.constant 0 : i32
    return %c0_i32, %c0_i32_0 : i32, i32
  }
  func.func @transform_4(%arg0: i32) -> (i32, i32) {
    %c0_i32 = arith.constant 0 : i32
    %c0_i32_0 = arith.constant 0 : i32
    %c0_i32_1 = arith.constant 0 : i32
    return %c0_i32, %c0_i32_0 : i32, i32
  }
  func.func @transform_5(%arg0: i32) -> (i32, i32) {
    %c0_i32 = arith.constant 0 : i32
    %c0_i32_0 = arith.constant 0 : i32
    %c0_i32_1 = arith.constant 0 : i32
    return %c0_i32, %c0_i32_0 : i32, i32
  }
  func.func @transform_6(%arg0: i32) -> (i32, i32) {
    %c0_i32 = arith.constant 0 : i32
    %c0_i32_0 = arith.constant 0 : i32
    %c0_i32_1 = arith.constant 0 : i32
    return %c0_i32, %c0_i32_0 : i32, i32
  }
  func.func @transform_7(%arg0: i32) -> (i32, i32) {
    %c0_i32 = arith.constant 0 : i32
    %c0_i32_0 = arith.constant 0 : i32
    %c0_i32_1 = arith.constant 0 : i32
    return %c0_i32, %c0_i32_0 : i32, i32
  }
  func.func @transform_8(%arg0: i32) -> (i32, i32) {
    %c0_i32 = arith.constant 0 : i32
    %c0_i32_0 = arith.constant 0 : i32
    return %arg0, %c0_i32 : i32, i32
  }
  func.func @transform_9(%arg0: i32) -> (i32, i32) {
    %c0_i32 = arith.constant 0 : i32
    %c0_i32_0 = arith.constant 0 : i32
    %c0_i32_1 = arith.constant 0 : i32
    return %c0_i32, %c0_i32_0 : i32, i32
  }
  func.func @transform_10(%arg0: i32) -> (i32, i32) {
    %c0_i32 = arith.constant 0 : i32
    %c0_i32_0 = arith.constant 0 : i32
    %c0_i32_1 = arith.constant 0 : i32
    return %c0_i32, %c0_i32_0 : i32, i32
  }
}

</mosaic_0001>

<bundles_post_ra>
// kernel: rnn_model_forward.1
= control target key start
LH: loop header
LB: loop body
LE: loop exit
PB: predicated region body
PF: predicated region fallthrough
CT: control target
= control target key end

     0   :  { %s1171_s13 = smov 0   ;;  %s1305_s0 = inlined_call_operand.vmem [shape: bf16[64,16], index: 0, kind: input, shape index: {}]   ;;  %s1306_s1 = inlined_call_operand.vmem [shape: bf16[16,128], index: 1, kind: input, shape index: {}]   ;;  %s1307_s2 = inlined_call_operand.vmem [shape: bf16[32,128], index: 2, kind: input, shape index: {}]   ;;  %s1308_s3 = inlined_call_operand.vmem [shape: f32[1,128], index: 3, kind: input, shape index: {}]   ;;  %s1309_s4 = inlined_call_operand.vmem [shape: bf16[32,128], index: 4, kind: input, shape index: {}]   ;;  %s1310_s5 = inlined_call_operand.vmem [shape: f32[1,128], index: 5, kind: input, shape index: {}]   ;;  %s1311_s6 = inlined_call_operand.vmem [shape: f32[8,32], index: 6, kind: input, shape index: {}]   ;;  %s1312_s7 = inlined_call_operand.vmem [shape: f32[8,32], index: 7, kind: input, shape index: {}]   ;;  %s1313_s8 = inlined_call_operand.vmem [shape: f32[64,128], index: 8, kind: output, shape index: {0}]   ;;  %s1314_s9 = inlined_call_operand.vmem [shape: f32[8,32], index: 9, kind: output, shape index: {1}]   ;;  %s1315_s10 = inlined_call_operand.vmem [shape: f32[8,32], index: 10, kind: output, shape index: {2}]  }
   0x1 LB: > { %s953_s14 = sadd.s32 4294967295, %s1109_s13   ;;  %p957_p0 = scmp.ge.s32.totalorder %s1109_s13, 1  ;;  %s1109_s13 = sphi %s1171_s13, %s21_s13  }
   0x2   : > { %p308_p1 = scmp.lt.s32.totalorder %s1109_s13, 3 }
   0x4   : > { %p309_p2 = pnand %p957_p0, %p308_p1 }
   0x5   : > { %s958_s15 = sshll.u32 (!%p309_p2), %s953_s14, 2  ;;  %p962_p4 = scmp.ne.s32.totalorder (!%p309_p2), %s953_s14, 0 }
   0x6   : > { %312 = sbr.rel (%p309_p2) target bundleno = 3071 (0xbff), region = 52  ;;  %p347_p3 = scmp.lt.s32.totalorder (!%p309_p2), %s958_s15, 7 }
   0xd   : > { %s1317_s15 = smov (!%p347_p3, %s958_s15), 7  ;;  %362 = sbr.rel (%p962_p4) target bundleno = 20 (0x14), region = 56 }
   0xe   : > { %s959_s16 = sshll.u32 %s1317_s15, 2  ;;  %s961_s17 = sshll.u32 %s1317_s15, 3  ;;  %v363_v0 = vld [vmem:[%s1311_s6] sm:$0xff] (!%p962_p4)  ;;  %vm364_vm0 = vcmask (!%p962_p4), 261120  }
   0xf   : > { %s350_s20 = scalar_lea.vmem %s1305_s0, %s959_s16  ;;  %s1185_s23 = scalar_lea.vmem %s1313_s8, %s961_s17  ;;  %v366_v1 = vld [vmem:[%s1312_s7] sm:$0xff] (!%p962_p4)  ;;  %365 = vst.msk [vmem:[#allocation4] sm:$0xff] (!%p962_p4), %vm364_vm0, %v363_v0 }
  0x10   : > { %367 = vst.msk [vmem:[#allocation5] sm:$0xff] (!%p962_p4), %vm364_vm0, %v366_v1 }
  0x14 PF: > { %v1064_v2 = vld [vmem:[%s1306_s1] sm:$0xff]   ;;  %v1111_v3 = vmov 0.0   ;;  %vm397_vm1 = vcmask 130048   ;;  %v1067_v6 = vld [vmem:[%s350_s20 + $0x8] sm:$0xff]   ;;  %vm1112_vm2 = vmmov 0   ;;  %vm477_vm3 = vcmask 261120  }
  0x15   : > { %1011 = vmatprep.subr.bf16.mxu1 %v1111_v3  ;;  %v1200_v4 = vld [vmem:[%s1307_s2] sm:$0xff]   ;;  %1005 = vmatprep.subr.bf16.mxu0 %v1064_v2  ;;  %v1207_v7 = vld [vmem:[%s1307_s2 + $0x8] sm:$0xff]   ;;  %s1113_s17 = smov 64   ;;  %s1114_s18 = smov 32  }
  0x16   : > { %v1066_v5 = vld [vmem:[%s350_s20] sm:$0xff]   ;;  %1012 = vmatpush3.bf16.msra.mxu1 %v1200_v4  ;;  %1006 = vmatpush3.bf16.msra.mxu0 %v1064_v2  ;;  %s1115_s19 = smov 96  }
  0x17   : > { %1007 = vmatprep.mubr.msk.bf16.mxu0 %vm397_vm1, %v1066_v5  ;;  %1013 = vmatprep.subr.bf16.mxu1 %v1111_v3  ;;  %v461_v8 = vld [vmem:[#allocation4] sm:$0xff]  ;;  %v462_v25 = vld [vmem:[#allocation5] sm:$0xff] }
  0x18   : > { %1015 = vmatprep.mubr.msk.bf16.mxu1 %vm1112_vm2, %v1111_v3  ;;  %1019 = vmatprep.subr.bf16.mxu0 %v1111_v3  ;;  %v464_v9 = vpack.c.bf16 %v461_v8, %v461_v8  ;;  %v963_v10 = vld [vmem:[%s1308_s3] ss:$0 sm:$0xff] }
  0x19   : > { %1008 = vmatmul.mubr.msk.bf16.vlgmr.msra.gmra.mrb[0].mxu0 %vm397_vm1, %v1067_v6 }
  0x1a   : > { %1014 = vmatpush3.bf16.msra.mxu1 %v1207_v7  ;;  %1020 = vmatpush3.bf16.msra.mxu0 %v1200_v4 }
  0x1b   : > { %1021 = vmatprep.subr.bf16.mxu0 %v1111_v3  ;;  %1023 = vmatprep.mubr.msk.bf16.mxu0 %vm1112_vm2, %v1111_v3 }
  0x1c   : > { %1027 = vmatprep.subr.bf16.mxu1 %v1111_v3 }
  0x1d   : > { %1016 = vmatmul.mubr.msk.bf16.vlgmr.msra.gmra.mrb[0].mxu1 %vm477_vm3, %v464_v9 }
  0x1e   : > { %1022 = vmatpush3.bf16.msra.mxu0 %v1207_v7  ;;  %1028 = vmatpush3.bf16.msra.mxu1 %v1200_v4 }
  0x1f   : > { %1029 = vmatprep.subr.bf16.mxu1 %v1111_v3  ;;  %1031 = vmatprep.mubr.msk.bf16.mxu1 %vm1112_vm2, %v1111_v3 }
  0x20   : > { %1035 = vmatprep.subr.bf16.mxu0 %v1111_v3 }
  0x22   : > { %1030 = vmatpush3.bf16.msra.mxu1 %v1207_v7 }
  0xec   : > { %v1009_v11 = vpop.f32.mrb[0].mxu0 }
  0xed   : > { %v1229_v12 = vadd.f32 %v1009_v11, %v963_v10  ;;  %v438_v13 = vpop.f32.mrb[1].mxu0 }
  0xee   : > { %v439_v14 = vadd.f32 %v963_v10, %v438_v13  ;;  %v1010_v15 = vpop.f32.mrb[2].mxu0 }
  0xef   : > { %v1231_v16 = vadd.f32 %v1010_v15, %v963_v10  ;;  %v441_v17 = vpop.f32.mrb[3].mxu0 }
  0xf0   : > { %v442_v18 = vadd.f32 %v963_v10, %v441_v17  ;;  %v515_v19 = vpop.f32.mrb[0].mxu1 }
  0xf1   : > { %v521_v20 = vadd.f32 %v515_v19, %v439_v14  ;;  %v1017_v21 = vpop.f32.mrb[1].mxu1 }
  0xf2   : > { %v518_v22 = vpop.f32.mrb[2].mxu1 }
  0xf3   : > { %1071 = vtanh.f32 %v521_v20  ;;  %v1018_v23 = vpop.f32.mrb[3].mxu1  ;;  %v972_v26 = vmul.f32 -1.442695, %v521_v20 }
  0xf5   : > { %1073 = vpow2.f32 %v972_v26 }
  0xfd   : > { %v1072_v24 = vpop.eup %1071 }
  0xfe   : > { %535 = vrot.lane.b32.xlu0 %v1072_v24, %s1113_s17 }
  0xff   : > { %v1074_v27 = vpop.eup %1073 }
 0x100   : > { %v525_v28 = vadd.f32 1.0, %v1074_v27 }
 0x102   : > { %530 = vrot.lane.b32.xlu0 %v462_v25, %s1114_s18  ;;  %1075 = vrcp.f32 %v525_v28 }
 0x10c   : > { %v1076_v29 = vpop.eup %1075 }
 0x170   : > { %v536_v30 = vpop.permute.xlu0 %535 }
 0x171   : > { %v538_v31 = vmul.f32 %v1076_v29, %v536_v30 }
 0x173   : > { %540 = vrot.lane.b32.xlu1 %v538_v31, %s1114_s18 }
 0x174   : > { %v531_v32 = vpop.permute.xlu0 %530 }
 0x175   : > { %v533_v33 = vmul.f32 %v1076_v29, %v531_v32 }
 0x1e5   : > { %v541_v34 = vpop.permute.xlu1 %540 }
 0x1e6   : > { %v543_v35 = vadd.f32 %v541_v34, %v533_v33 }
 0x1e8   : > { %1077 = vtanh.f32 %v543_v35 }
 0x1f2   : > { %v1078_v36 = vpop.eup %1077 }
 0x1f3   : > { %546 = vrot.lane.b32.xlu1 %v1078_v36, %s1113_s17  ;;  %v1069_v36 = vld [vmem:[%s1309_s4] sm:$0xff]  }
 0x1f4   : > { %1043 = vmatprep.subr.bf16.mxu1 %v1069_v36 }
 0x265   : > { %v547_v37 = vpop.permute.xlu1 %546 }
 0x266   : > { %v1237_v38 = vmul.f32 %v1076_v29, %v547_v37  ;;  %v1070_v37 = vld [vmem:[%s1309_s4 + $0x8] sm:$0xff]  }
 0x268   : > { %v556_v39 = vpack.c.bf16 %v1237_v38, %v1237_v38 }
 0x26a   : > { %558 = vrot.lane.b32.xlu0 %v556_v39, %s1114_s18 }
 0x2dc   : > { %v559_v40 = vpop.permute.xlu0 %558 }
 0x2dd   : > { %1024 = vmatmul.mubr.msk.bf16.vlgmr.msra.gmra.mrb[4].mxu0 %vm477_vm3, %v559_v40 }
 0x2de   : > { %1036 = vmatpush3.bf16.msra.mxu0 %v1200_v4  ;;  %1039 = vmatprep.mubr.msk.bf16.mxu0 %vm1112_vm2, %v1111_v3 }
 0x2df   : > { %1037 = vmatprep.subr.bf16.mxu0 %v1111_v3 }
 0x2e2   : > { %1038 = vmatpush3.bf16.msra.mxu0 %v1207_v7 }
 0x3b0   : > { %v597_v41 = vpop.f32.mrb[4].mxu0 }
 0x3b1   : > { %v603_v42 = vadd.f32 %v597_v41, %v442_v18  ;;  %v1025_v43 = vpop.f32.mrb[5].mxu0 }
 0x3b2   : > { %v600_v44 = vpop.f32.mrb[6].mxu0 }
 0x3b3   : > { %1079 = vtanh.f32 %v603_v42  ;;  %v1026_v45 = vpop.f32.mrb[7].mxu0  ;;  %v974_v47 = vmul.f32 -1.442695, %v603_v42 }
 0x3b5   : > { %1081 = vpow2.f32 %v974_v47 }
 0x3bd   : > { %v1080_v46 = vpop.eup %1079 }
 0x3be   : > { %613 = vrot.lane.b32.xlu1 %v1080_v46, %s1113_s17 }
 0x3bf   : > { %v1082_v48 = vpop.eup %1081 }
 0x3c0   : > { %v607_v49 = vadd.f32 1.0, %v1082_v48  ;;  %v979_v48 = vld [vmem:[%s1310_s5] ss:$0 sm:$0xff] }
 0x3c2   : > { %1083 = vrcp.f32 %v607_v49 }
 0x3cc   : > { %v1084_v50 = vpop.eup %1083 }
 0x3cd   : > { %v611_v53 = vmul.f32 %v1084_v50, %v543_v35 }
 0x430   : > { %v614_v51 = vpop.permute.xlu1 %613 }
 0x431   : > { %v616_v52 = vmul.f32 %v1084_v50, %v614_v51 }
 0x433   : > { %618 = vrot.lane.b32.xlu0 %v616_v52, %s1114_s18 }
 0x4a5   : > { %v619_v54 = vpop.permute.xlu0 %618 }
 0x4a6   : > { %v621_v55 = vadd.f32 %v619_v54, %v611_v53 }
 0x4a8   : > { %1085 = vtanh.f32 %v621_v55 }
 0x4b2   : > { %v1086_v56 = vpop.eup %1085 }
 0x4b3   : > { %624 = vrot.lane.b32.xlu1 %v1086_v56, %s1113_s17 }
 0x525   : > { %v625_v57 = vpop.permute.xlu1 %624 }
 0x526   : > { %v1251_v58 = vmul.f32 %v1084_v50, %v625_v57 }
 0x528   : > { %v634_v59 = vpack.c.bf16 %v1251_v58, %v1251_v58 }
 0x52a   : > { %636 = vrot.lane.b32.xlu0 %v634_v59, %s1114_s18 }
 0x59c   : > { %v637_v60 = vpop.permute.xlu0 %636 }
 0x59d   : > { %1032 = vmatmul.mubr.msk.bf16.vlgmr.msra.gmra.mrb[4].mxu1 %vm477_vm3, %v637_v60 }
 0x59e   : > { %1044 = vmatpush3.bf16.msra.mxu1 %v1069_v36 }
 0x59f   : > { %1045 = vmatprep.subr.bf16.mxu1 %v1070_v37 }
 0x5a2   : > { %1046 = vmatpush3.bf16.msra.mxu1 %v1070_v37 }
 0x670   : > { %v675_v61 = vpop.f32.mrb[4].mxu1 }
 0x671   : > { %v681_v62 = vadd.f32 %v675_v61, %v1229_v12  ;;  %v1033_v63 = vpop.f32.mrb[5].mxu1 }
 0x672   : > { %v678_v0 = vpop.f32.mrb[6].mxu1 }
 0x673   : > { %1087 = vtanh.f32 %v681_v62  ;;  %v1034_v1 = vpop.f32.mrb[7].mxu1  ;;  %v976_v3 = vmul.f32 -1.442695, %v681_v62 }
 0x675   : > { %1089 = vpow2.f32 %v976_v3 }
 0x67d   : > { %v1088_v2 = vpop.eup %1087 }
 0x67e   : > { %691 = vrot.lane.b32.xlu1 %v1088_v2, %s1113_s17 }
 0x67f   : > { %v1090_v4 = vpop.eup %1089 }
 0x680   : > { %v685_v5 = vadd.f32 1.0, %v1090_v4 }
 0x682   : > { %1091 = vrcp.f32 %v685_v5 }
 0x68c   : > { %v1092_v6 = vpop.eup %1091 }
 0x68d   : > { %v689_v9 = vmul.f32 %v1092_v6, %v621_v55 }
 0x6f0   : > { %v692_v7 = vpop.permute.xlu1 %691 }
 0x6f1   : > { %v694_v8 = vmul.f32 %v1092_v6, %v692_v7 }
 0x6f3   : > { %696 = vrot.lane.b32.xlu0 %v694_v8, %s1114_s18 }
 0x765   : > { %v697_v10 = vpop.permute.xlu0 %696 }
 0x766   : > { %v699_v11 = vadd.f32 %v697_v10, %v689_v9 }
 0x768   : > { %1093 = vtanh.f32 %v699_v11 }
 0x772   : > { %v1094_v12 = vpop.eup %1093 }
 0x773   : > { %702 = vrot.lane.b32.xlu1 %v1094_v12, %s1113_s17 }
 0x7e5   : > { %v703_v13 = vpop.permute.xlu1 %702 }
 0x7e6   : > { %v705_v14 = vmul.f32 %v1092_v6, %v703_v13 }
 0x7e8   : > { %v712_v15 = vpack.c.bf16 %v705_v14, %v705_v14 }
 0x7ea   : > { %714 = vrot.lane.b32.xlu0 %v712_v15, %s1114_s18 }
 0x85c   : > { %v715_v17 = vpop.permute.xlu0 %714 }
 0x85d   : > { %1040 = vmatmul.mubr.msk.bf16.vlgmr.msra.gmra.mrb[8].mxu0 %vm477_vm3, %v715_v17 }
 0x930   : > { %v753_v18 = vpop.f32.mrb[8].mxu0 }
 0x931   : > { %v759_v19 = vadd.f32 %v753_v18, %v1231_v16  ;;  %v1041_v20 = vpop.f32.mrb[9].mxu0 }
 0x932   : > { %v756_v21 = vpop.f32.mrb[10].mxu0 }
 0x933   : > { %1095 = vtanh.f32 %v759_v19  ;;  %v1042_v22 = vpop.f32.mrb[11].mxu0  ;;  %v978_v24 = vmul.f32 -1.442695, %v759_v19 }
 0x935   : > { %1097 = vpow2.f32 %v978_v24 }
 0x93d   : > { %v1096_v23 = vpop.eup %1095 }
 0x93e   : > { %769 = vrot.lane.b32.xlu1 %v1096_v23, %s1113_s17 }
 0x93f   : > { %v1098_v25 = vpop.eup %1097 }
 0x940   : > { %v763_v26 = vadd.f32 1.0, %v1098_v25 }
 0x942   : > { %1099 = vrcp.f32 %v763_v26 }
 0x94c   : > { %v1100_v27 = vpop.eup %1099 }
 0x94d   : > { %v767_v16 = vmul.f32 %v1100_v27, %v699_v11 }
 0x9b0   : > { %v770_v28 = vpop.permute.xlu1 %769 }
 0x9b1   : > { %v772_v29 = vmul.f32 %v1100_v27, %v770_v28 }
 0x9b3   : > { %774 = vrot.lane.b32.xlu0 %v772_v29, %s1114_s18 }
 0x9b7   : > { %551 = vrot.lane.b32.xlu0 %v1237_v38, %s1114_s18 }
 0x9bb   : > { %707 = vrot.lane.b32.xlu0 %v705_v14, %s1114_s18 }
 0xa25   : > { %v775_v30 = vpop.permute.xlu0 %774 }
 0xa26   : > { %v777_v31 = vadd.f32 %v775_v30, %v767_v16 }
 0xa28   : > { %1101 = vtanh.f32 %v777_v31  ;;  %791 = vrot.lane.b32.xlu0 %v777_v31, %s1115_s19 }
 0xa29   : > { %v552_v32 = vpop.permute.xlu0 %551 }
 0xa2a   : > { %554 = vst.msk [vmem:[#allocation3] sm:$0xff] %vm477_vm3, %v552_v32 }
 0xa2d   : > { %v708_v33 = vpop.permute.xlu0 %707 }
 0xa2e   : > { %710 = vst.msk [vmem:[#allocation3 + $0x10] sm:$0xff] %vm477_vm3, %v708_v33 }
 0xa31   : > { %v797_v41 = vld [vmem:[#allocation3] sm:$0xff] }
 0xa32   : > { %v1102_v34 = vpop.eup %1101 }
 0xa33   : > { %780 = vrot.lane.b32.xlu1 %v1102_v34, %s1113_s17 }
 0xa35   : > { %v799_v45 = vld [vmem:[#allocation3 + $0x10] sm:$0xff] }
 0xa37   : > { %629 = vrot.lane.b32.xlu1 %v1251_v58, %s1114_s18 }
 0xa9a   : > { %v792_v35 = vpop.permute.xlu0 %791 }
 0xa9b   : > { %794 = vst.msk [vmem:[#allocation5] sm:$0xff] %vm477_vm3, %v792_v35  ;;  %796 = vst.msk [vmem:[%s1315_s10] sm:$0xff] %vm477_vm3, %v792_v35 }
 0xaa5   : > { %v781_v38 = vpop.permute.xlu1 %780 }
 0xaa6   : > { %v783_v39 = vmul.f32 %v1100_v27, %v781_v38 }
 0xaa8   : > { %785 = vrot.lane.b32.xlu1 %v783_v39, %s1114_s18 }
 0xaa9   : > { %v630_v40 = vpop.permute.xlu1 %629 }
 0xaaa   : > { %632 = vst.msk [vmem:[#allocation3 + $0x8] sm:$0xff] %vm477_vm3, %v630_v40 }
 0xab1   : > { %v798_v42 = vld [vmem:[#allocation3 + $0x8] sm:$0xff] }
 0xab2   : > { %v801_v43 = vpack.c.bf16 %v798_v42, %v797_v41 }
 0xab4   : > { %1047 = vmatprep.mubr.msk.bf16.mxu1 %vm477_vm3, %v801_v43 }
 0xb1a   : > { %v786_v44 = vpop.permute.xlu1 %785 }
 0xb1b   : > { %788 = vst.msk [vmem:[#allocation3 + $0x18] sm:$0xff] %vm477_vm3, %v786_v44  ;;  %789 = vst.msk [vmem:[#allocation4] sm:$0xff] %vm477_vm3, %v786_v44 }
 0xb1c   : > { %795 = vst.msk [vmem:[%s1314_s9] sm:$0xff] %vm477_vm3, %v786_v44 }
 0xb22   : > { %v800_v46 = vld [vmem:[#allocation3 + $0x18] sm:$0xff] }
 0xb23   : > { %v802_v47 = vpack.c.bf16 %v800_v46, %v799_v45 }
 0xb25   : > { %1048 = vmatmul.mubr.msk.bf16.vlgmr.msra.gmra.mrb[8].mxu1 %vm477_vm3, %v802_v47 }
 0xbf8   : > { %v1049_v49 = vpop.f32.mrb[8].mxu1 }
 0xbf9   : > { %v866_v50 = vpop.f32.mrb[9].mxu1  ;;  %v875_v55 = vadd.f32 %v1049_v49, %v979_v48 }
 0xbfa   : > { %v867_v51 = vadd.f32 %v979_v48, %v866_v50  ;;  %v1050_v52 = vpop.f32.mrb[10].mxu1 }
 0xbfb   : > { %v869_v53 = vpop.f32.mrb[11].mxu1  ;;  %v878_v56 = vadd.f32 %v1050_v52, %v979_v48  ;;  %883 = vst [vmem:[%s1185_s23 + $0x10] sm:$0xff] %v875_v55 }
 0xbfc   : > { %881 = vst [vmem:[%s1185_s23] sm:$0xff] %v867_v51  ;;  %v870_v54 = vadd.f32 %v979_v48, %v869_v53 }
 0xbfd   : > { %884 = vst [vmem:[%s1185_s23 + $0x18] sm:$0xff] %v878_v56 }
 0xbfe   : > { %882 = vst [vmem:[%s1185_s23 + $0x8] sm:$0xff] %v870_v54 }
 0xbff PF: > { %s21_s13 = sadd.s32 1, %s1109_s13  }
 0xc00   : > { %p18_p5 = scmp.ge.s32.totalorder %s21_s13, 4  }
 0xc02   :  { %20 = sbr.rel (!%p18_p5) target bundleno = 1 (0x1), region = 102 }

</bundles_post_ra>
